<compile_context>
chip_gen: v7x
topology: tpu7x:2x2x1
jax: 0.10.0
libtpu: 0.0.40
codegen_flags: <defaults>
</compile_context>

<pallas_src>
import math
from functools import partial

import jax
import jax.numpy as jnp
from jax import lax
from jax.experimental import pallas as pl
from jax.experimental.pallas import tpu as pltpu

RMS_EPS = 1e-5  # TODO(synk): reference eps unspecified; Mistral-style 1e-5 used.


def _rms(x, w, eps):
    var = jnp.mean(x * x, axis=-1, keepdims=True)
    return x * lax.rsqrt(var + eps) * w


# --------------------------------------------------------------------------
# Fused attention sub-block kernel (per batch element)
#   RMSNorm -> QKV matmul -> RoPE -> windowed causal softmax attention
#   -> output projection + residual -> RMSNorm -> MoE gate logits
# --------------------------------------------------------------------------

def _attn_block_kernel(x_ref, ln1_ref, ln2_ref, wqkv_ref, wo_ref, wg_ref,
                       cos_ref, sin_ref,
                       x1_ref, gl_ref,
                       *, num_heads, head_dim, window, eps):
    x = x_ref[0]                                     # (S, H) f32
    S, H = x.shape
    h2 = head_dim // 2

    # RMSNorm fused into the QKV matmul prologue; 1/sqrt(hd) already folded
    # into the wq columns at init.
    xn = _rms(x, ln1_ref[...], eps)
    qkv = jnp.dot(xn.astype(jnp.bfloat16), wqkv_ref[...],
                  preferred_element_type=jnp.float32)          # (S, 3H) f32

    def heads(mat):                                  # (S, H) -> (nh, S, hd)
        return jnp.stack(
            [mat[:, h * head_dim:(h + 1) * head_dim] for h in range(num_heads)],
            axis=0)

    q = heads(qkv[:, :H])
    k = heads(qkv[:, H:2 * H])
    v = heads(qkv[:, 2 * H:]).astype(jnp.bfloat16)

    # Rotate-half RoPE on the de-interleaved q/k layout (equivalent to the
    # torch.polar interleaved-pair convention because the q/k weight columns
    # were consistently permuted at init; attention scores are unchanged).
    cos = cos_ref[...][None]                         # (1, S, hd)
    sin = sin_ref[...][None]

    def rope(t):
        swapped = jnp.concatenate([-t[..., h2:], t[..., :h2]], axis=-1)
        return t * cos + swapped * sin

    q_rot = rope(q).astype(jnp.bfloat16)
    k_rot = rope(k).astype(jnp.bfloat16)

    i = lax.broadcasted_iota(jnp.int32, (S, S), 0)
    j = lax.broadcasted_iota(jnp.int32, (S, S), 1)
    mask = (j <= i) & ((i - j) < window)             # causal + sliding window

    # Batched-over-heads score / PV matmuls: bf16 MXU operands, f32 accum.
    s = jnp.einsum('hqd,hkd->hqk', q_rot, k_rot,
                   preferred_element_type=jnp.float32)          # (nh, S, S)
    s = jnp.where(mask[None], s, -1e30)
    m = jnp.max(s, axis=-1, keepdims=True)
    p = jnp.exp(s - m)
    p = p * pl.reciprocal(jnp.sum(p, axis=-1, keepdims=True), approx=True)

    attn = jnp.einsum('hqk,hkd->hqd', p.astype(jnp.bfloat16), v,
                      preferred_element_type=jnp.float32)       # (nh, S, hd)
    attn = jnp.concatenate([attn[h] for h in range(num_heads)], axis=-1)

    x1 = x + jnp.dot(attn.astype(jnp.bfloat16), wo_ref[...],
                     preferred_element_type=jnp.float32)        # residual fused
    x1_ref[0] = x1

    # Second RMSNorm + MoE gate logits fused into the epilogue (xn2 is NOT
    # written back to HBM; the MoE kernel recomputes it from x1).
    xn2 = _rms(x1, ln2_ref[...], eps)
    gl_ref[0] = jnp.dot(xn2.astype(jnp.bfloat16), wg_ref[...],
                        preferred_element_type=jnp.float32)


def attn_block(x, ln1, ln2, wqkv, wo, wg, cos, sin, *, num_heads, window):
    B, S, H = x.shape
    E = wg.shape[1]
    head_dim = H // num_heads

    def full(shape):
        return pl.BlockSpec(shape, lambda b, _s=shape: (0,) * len(_s))

    # TODO(synk): on v7x, pipeline_mode=pl.Buffered(1) on the grid-invariant
    #             weight specs would halve their VMEM footprint.
    return pl.pallas_call(
        partial(_attn_block_kernel, num_heads=num_heads, head_dim=head_dim,
                window=window, eps=RMS_EPS),
        out_shape=(jax.ShapeDtypeStruct((B, S, H), jnp.float32),
                   jax.ShapeDtypeStruct((B, S, E), jnp.float32)),
        grid=(B,),
        in_specs=[pl.BlockSpec((1, S, H), lambda b: (b, 0, 0)),
                  full((1, H)), full((1, H)),
                  full((H, 3 * H)), full((H, H)), full((H, E)),
                  full((S, head_dim)), full((S, head_dim))],
        out_specs=[pl.BlockSpec((1, S, H), lambda b: (b, 0, 0)),
                   pl.BlockSpec((1, S, E), lambda b: (b, 0, 0))],
        compiler_params=pltpu.CompilerParams(
            dimension_semantics=("parallel",)),
    )(x, ln1, ln2, wqkv, wo, wg, cos, sin)


# --------------------------------------------------------------------------
# Fused MoE (SwiGLU experts) kernel: grid = (token_blocks, experts)
#   residual accumulator init at e==0, RMSNorm recomputed once per token
#   block into VMEM scratch, skipped experts skip compute AND weight DMA.
# --------------------------------------------------------------------------

def _moe_kernel(flags_ref, dma_ref, x1_ref, comb_ref, ln2_ref,
                w1_ref, w3_ref, w2_ref, o_ref, xn_sc, *, eps):
    t = pl.program_id(0)
    e = pl.program_id(1)

    @pl.when(e == 0)
    def _():                                  # init accumulator with residual
        x1 = x1_ref[...]
        o_ref[...] = x1
        xn_sc[...] = _rms(x1, ln2_ref[...], eps).astype(jnp.bfloat16)

    @pl.when(flags_ref[t, e] != 0)            # skip experts no token routed to
    def _():
        xn = xn_sc[...]                                         # (tm, H) bf16
        h1 = jnp.dot(xn, w1_ref[0], preferred_element_type=jnp.float32)
        h3 = jnp.dot(xn, w3_ref[0], preferred_element_type=jnp.float32)
        h = h1 * jax.nn.sigmoid(h1) * h3                        # SwiGLU (f32)
        he = jnp.dot(h.astype(jnp.bfloat16), w2_ref[0],
                     preferred_element_type=jnp.float32)        # (tm, H)
        o_ref[...] += comb_ref[0] * he                          # (tm,1)*(tm,H)


def moe_block(x1, combine_e, flags, dma_idx, ln2, w1, w3, w2, *, tm):
    T, H = x1.shape
    E, _, F = w1.shape
    gs = pltpu.PrefetchScalarGridSpec(
        num_scalar_prefetch=2,
        grid=(T // tm, E),
        in_specs=[pl.BlockSpec((tm, H), lambda t, e, fl, di: (t, 0)),
                  pl.BlockSpec((1, tm, 1), lambda t, e, fl, di: (e, t, 0)),
                  pl.BlockSpec((1, H), lambda t, e, fl, di: (0, 0)),
                  # dma_idx repeats the previous routed expert when flags==0
                  # so the weight copy is elided for skipped experts.
                  pl.BlockSpec((1, H, F), lambda t, e, fl, di: (di[t, e], 0, 0)),
                  pl.BlockSpec((1, H, F), lambda t, e, fl, di: (di[t, e], 0, 0)),
                  pl.BlockSpec((1, F, H), lambda t, e, fl, di: (di[t, e], 0, 0))],
        out_specs=pl.BlockSpec((tm, H), lambda t, e, fl, di: (t, 0)),
        scratch_shapes=[pltpu.VMEM((tm, H), jnp.bfloat16)],
    )
    return pl.pallas_call(
        partial(_moe_kernel, eps=RMS_EPS),
        out_shape=jax.ShapeDtypeStruct((T, H), jnp.float32),
        grid_spec=gs,
        compiler_params=pltpu.CompilerParams(
            dimension_semantics=("parallel", "arbitrary")),
    )(flags, dma_idx, x1, combine_e, ln2, w1, w3, w2)


# --------------------------------------------------------------------------
# Final RMSNorm + vocab projection
# --------------------------------------------------------------------------

def _head_kernel(x_ref, lnf_ref, wout_ref, o_ref, *, eps):
    xn = _rms(x_ref[...], lnf_ref[...], eps)
    o_ref[...] = jnp.dot(xn.astype(jnp.bfloat16), wout_ref[...],
                         preferred_element_type=jnp.float32)


def lm_head(x, lnf, wout, *, tm):
    T, H = x.shape
    V = wout.shape[1]
    return pl.pallas_call(
        partial(_head_kernel, eps=RMS_EPS),
        out_shape=jax.ShapeDtypeStruct((T, V), jnp.float32),
        grid=(T // tm,),
        in_specs=[pl.BlockSpec((tm, H), lambda t: (t, 0)),
                  pl.BlockSpec((1, H), lambda t: (0, 0)),
                  pl.BlockSpec((H, V), lambda t: (0, 0))],
        out_specs=pl.BlockSpec((tm, V), lambda t: (t, 0)),
        compiler_params=pltpu.CompilerParams(
            dimension_semantics=("parallel",)),
    )(x, lnf, wout)


# --------------------------------------------------------------------------
# Parameter init (deterministic, synthetic) and JAX glue
# --------------------------------------------------------------------------

def _rope_tables(head_dim, max_seq_len, period=10000.0):
    # Same frequencies as get_rotation_matrix(head_dim, max_seq_len, period)
    # (torch.polar interleaved convention), laid out in rotate-half order:
    # cos[j] = cos[j + hd/2] = cos(pos * period^(-2j/hd)).
    inv_freq = 1.0 / (period ** (jnp.arange(0, head_dim, 2, dtype=jnp.float32)
                                 / head_dim))
    t = jnp.arange(max_seq_len, dtype=jnp.float32)
    freqs = jnp.outer(t, inv_freq)                       # (L, hd/2)
    cos = jnp.concatenate([jnp.cos(freqs), jnp.cos(freqs)], axis=-1)
    sin = jnp.concatenate([jnp.sin(freqs), jnp.sin(freqs)], axis=-1)
    return cos, sin                                      # (L, hd)


def _deinterleave_perm(num_heads, head_dim):
    # Per-head column permutation [0,2,4,...,1,3,5,...]: interleaved RoPE pairs
    # (2j, 2j+1) become rotate-half pairs (j, j + hd/2).  A consistent
    # permutation of q/k features leaves attention scores unchanged.
    perm = []
    for h in range(num_heads):
        base = h * head_dim
        perm += list(range(base, base + head_dim, 2))
        perm += list(range(base + 1, base + head_dim, 2))
    return jnp.array(perm, dtype=jnp.int32)


def init_params(key, *, vocab, hidden, num_heads, d_ff, num_experts, n_blocks,
                max_seq_len):
    head_dim = hidden // num_heads
    cos, sin = _rope_tables(head_dim, max_seq_len)
    perm = _deinterleave_perm(num_heads, head_dim)
    scale = 1.0 / math.sqrt(head_dim)
    keys = jax.random.split(key, 2 + n_blocks)

    def dense(k, shape):
        return 0.02 * jax.random.normal(k, shape, dtype=jnp.float32)

    params = {
        "embedding": dense(keys[0], (vocab, hidden)),
        "w_out": dense(keys[1], (hidden, vocab)).astype(jnp.bfloat16),
        "ln_f": jnp.ones((1, hidden), jnp.float32),
        "cos": cos, "sin": sin,
        "blocks": [],
    }
    for b in range(n_blocks):
        ks = jax.random.split(keys[2 + b], 8)
        # De-interleave q/k columns per head; fold 1/sqrt(head_dim) into wq.
        wq = dense(ks[0], (hidden, hidden))[:, perm] * scale
        wk = dense(ks[1], (hidden, hidden))[:, perm]
        wv = dense(ks[2], (hidden, hidden))
        wqkv = jnp.concatenate([wq, wk, wv], axis=1)            # (H, 3H)
        params["blocks"].append({
            "ln1": jnp.ones((1, hidden), jnp.float32),
            "ln2": jnp.ones((1, hidden), jnp.float32),
            "wqkv": wqkv.astype(jnp.bfloat16),
            "wo": dense(ks[3], (hidden, hidden)).astype(jnp.bfloat16),
            "w_gate": dense(ks[4], (hidden, num_experts)).astype(jnp.bfloat16),
            "w1": dense(ks[5], (num_experts, hidden, d_ff)).astype(jnp.bfloat16),
            "w3": dense(ks[6], (num_experts, hidden, d_ff)).astype(jnp.bfloat16),
            "w2": dense(ks[7], (num_experts, d_ff, hidden)).astype(jnp.bfloat16),
        })
    return params


def transformer_forward(params, tokens, *, num_heads, window_size,
                        n_experts_per_token):
    B, S = tokens.shape
    H = params["embedding"].shape[1]
    T = B * S
    tm = T if T <= 128 else 128
    assert T % tm == 0 and tm % 8 == 0

    # TODO(synk): embedding lookup (gather) kept in plain JAX glue.
    x = jnp.take(params["embedding"], tokens, axis=0)        # (B, S, H) f32
    cos = params["cos"][:S]
    sin = params["sin"][:S]

    for blk in params["blocks"]:
        x1, gate_logits = attn_block(
            x, blk["ln1"], blk["ln2"], blk["wqkv"], blk["wo"], blk["w_gate"],
            cos, sin, num_heads=num_heads, window=window_size)

        # TODO(synk): top-k routing (lax.top_k) has no Mosaic lowering; kept as
        #             tiny (T, E) JAX glue feeding combine weights + skip flags.
        gl = gate_logits.reshape(T, -1)
        E = gl.shape[-1]
        top_vals, top_idx = lax.top_k(gl, n_experts_per_token)
        top_w = jax.nn.softmax(top_vals, axis=-1)
        onehot = jax.nn.one_hot(top_idx, E, dtype=jnp.float32)
        combine = jnp.einsum("tk,tke->te", top_w, onehot)    # (T, E)
        flags = jnp.any(combine.reshape(T // tm, tm, E) != 0.0,
                        axis=1).astype(jnp.int32)            # (T//tm, E)
        # Repeat the previous routed expert's index when a block has no
        # traffic for expert e -> unchanged block index -> weight DMA elided.
        prev = jnp.zeros((T // tm,), jnp.int32)
        cols = []
        for e in range(E):
            prev = jnp.where(flags[:, e] != 0, jnp.int32(e), prev)
            cols.append(prev)
        dma_idx = jnp.stack(cols, axis=1)                    # (T//tm, E)
        combine_e = combine.T.reshape(E, T, 1)               # per-expert weights

        x = moe_block(x1.reshape(T, H), combine_e, flags, dma_idx,
                      blk["ln2"], blk["w1"], blk["w3"], blk["w2"],
                      tm=tm).reshape(B, S, H)

    logits = lm_head(x.reshape(T, H), params["ln_f"], params["w_out"], tm=tm)
    return logits.reshape(B, S, -1)


# --------------------------------------------------------------------------

if __name__ == "__main__":
    vocabulary_size = 64
    hidden_size = 32
    num_heads = 4
    window_size = 4
    d_ff = 64
    num_experts = 4
    n_experts_per_token = 2
    n_blocks = 2
    max_seq_len = 16

    batch, seq = 2, 8

    key = jax.random.PRNGKey(0)
    k_param, k_tok = jax.random.split(key)
    params = init_params(k_param, vocab=vocabulary_size, hidden=hidden_size,
                         num_heads=num_heads, d_ff=d_ff,
                         num_experts=num_experts, n_blocks=n_blocks,
                         max_seq_len=max_seq_len)
    tokens = jax.random.randint(k_tok, (batch, seq), 0, vocabulary_size,
                                dtype=jnp.int32)

    logits = transformer_forward(params, tokens, num_heads=num_heads,
                                 window_size=window_size,
                                 n_experts_per_token=n_experts_per_token)
    jax.block_until_ready(logits)
    assert logits.shape == (batch, seq, vocabulary_size)
    assert bool(jnp.all(jnp.isfinite(logits)))
    print("KERNEL_OK")
</pallas_src>

<mosaic_0001>
module attributes {stable_mosaic.version = 11 : i64} {
  func.func @_attn_block_kernel(%arg0: i32, %arg1: memref<1x8x32xf32, #tpu.memory_space<vmem>>, %arg2: memref<1x32xf32, #tpu.memory_space<vmem>>, %arg3: memref<1x32xf32, #tpu.memory_space<vmem>>, %arg4: memref<32x96xbf16, #tpu.memory_space<vmem>>, %arg5: memref<32x32xbf16, #tpu.memory_space<vmem>>, %arg6: memref<32x4xbf16, #tpu.memory_space<vmem>>, %arg7: memref<8x8xf32, #tpu.memory_space<vmem>>, %arg8: memref<8x8xf32, #tpu.memory_space<vmem>>, %arg9: memref<1x8x32xf32, #tpu.memory_space<vmem>>, %arg10: memref<1x8x4xf32, #tpu.memory_space<vmem>>) attributes {dimension_semantics = [#tpu.dimension_semantics<parallel>], iteration_bounds = array<i64: 2>, scalar_prefetch = 0 : i64, scratch_operands = 0 : i64, tpu.core_type = #tpu.core_type<tc>, window_params = [{transform_indices = @transform_0, window_bounds = array<i64: 1, 8, 32>}, {pipeline_mode = #tpu.pipeline_mode<synchronous>, transform_indices = @transform_1, window_bounds = array<i64: 1, 32>}, {pipeline_mode = #tpu.pipeline_mode<synchronous>, transform_indices = @transform_2, window_bounds = array<i64: 1, 32>}, {pipeline_mode = #tpu.pipeline_mode<synchronous>, transform_indices = @transform_3, window_bounds = array<i64: 32, 96>}, {pipeline_mode = #tpu.pipeline_mode<synchronous>, transform_indices = @transform_4, window_bounds = array<i64: 32, 32>}, {pipeline_mode = #tpu.pipeline_mode<synchronous>, transform_indices = @transform_5, window_bounds = array<i64: 32, 4>}, {pipeline_mode = #tpu.pipeline_mode<synchronous>, transform_indices = @transform_6, window_bounds = array<i64: 8, 8>}, {pipeline_mode = #tpu.pipeline_mode<synchronous>, transform_indices = @transform_7, window_bounds = array<i64: 8, 8>}, {transform_indices = @transform_8, window_bounds = array<i64: 1, 8, 32>}, {transform_indices = @transform_9, window_bounds = array<i64: 1, 8, 4>}]} {
    %c0 = arith.constant 0 : index
    %c0_0 = arith.constant 0 : index
    %c0_1 = arith.constant 0 : index
    %0 = vector.load %arg1[%c0, %c0_0, %c0_1] : memref<1x8x32xf32, #tpu.memory_space<vmem>>, vector<1x8x32xf32>
    %1 = vector.shape_cast %0 : vector<1x8x32xf32> to vector<8x32xf32>
    %c0_2 = arith.constant 0 : index
    %c0_3 = arith.constant 0 : index
    %2 = vector.load %arg2[%c0_2, %c0_3] : memref<1x32xf32, #tpu.memory_space<vmem>>, vector<1x32xf32>
    %3 = arith.mulf %1, %1 : vector<8x32xf32>
    %cst = arith.constant dense<0.000000e+00> : vector<8xf32>
    %4 = vector.multi_reduction <add>, %3, %cst [1] : vector<8x32xf32> to vector<8xf32>
    %5 = vector.shape_cast %4 : vector<8xf32> to vector<8x1xf32>
    %cst_4 = arith.constant 3.200000e+01 : f32
    %6 = vector.broadcast %cst_4 : f32 to vector<8x1xf32>
    %7 = arith.divf %5, %6 : vector<8x1xf32>
    %cst_5 = arith.constant 9.99999974E-6 : f32
    %8 = vector.broadcast %cst_5 : f32 to vector<8x1xf32>
    %9 = arith.addf %7, %8 : vector<8x1xf32>
    %10 = math.rsqrt %9 : vector<8x1xf32>
    %11 = vector.broadcast %10 : vector<8x1xf32> to vector<8x32xf32>
    %12 = arith.mulf %1, %11 : vector<8x32xf32>
    %13 = vector.broadcast %2 : vector<1x32xf32> to vector<8x32xf32>
    %14 = arith.mulf %12, %13 : vector<8x32xf32>
    %15 = arith.truncf %14 : vector<8x32xf32> to vector<8x32xbf16>
    %c0_6 = arith.constant 0 : index
    %c0_7 = arith.constant 0 : index
    %16 = vector.load %arg4[%c0_6, %c0_7] : memref<32x96xbf16, #tpu.memory_space<vmem>>, vector<32x96xbf16>
    %cst_8 = arith.constant dense<0.000000e+00> : vector<8x96xf32>
    %17 = tpu.matmul %15, %16, %cst_8 {dimension_numbers = #tpu.dot_dimension_numbers<[1], [0], [0], [1], [0, 0, 1, 1], [], []>} : vector<8x32xbf16>, vector<32x96xbf16>, vector<8x96xf32> -> vector<8x96xf32>
    %18 = vector.extract_strided_slice %17 {offsets = [0, 0], sizes = [8, 32], strides = [1, 1]} : vector<8x96xf32> to vector<8x32xf32>
    %19 = vector.extract_strided_slice %18 {offsets = [0, 0], sizes = [8, 8], strides = [1, 1]} : vector<8x32xf32> to vector<8x8xf32>
    %20 = vector.extract_strided_slice %18 {offsets = [0, 8], sizes = [8, 8], strides = [1, 1]} : vector<8x32xf32> to vector<8x8xf32>
    %21 = vector.extract_strided_slice %18 {offsets = [0, 16], sizes = [8, 8], strides = [1, 1]} : vector<8x32xf32> to vector<8x8xf32>
    %22 = vector.extract_strided_slice %18 {offsets = [0, 24], sizes = [8, 8], strides = [1, 1]} : vector<8x32xf32> to vector<8x8xf32>
    %23 = vector.shape_cast %19 : vector<8x8xf32> to vector<1x8x8xf32>
    %24 = vector.shape_cast %20 : vector<8x8xf32> to vector<1x8x8xf32>
    %25 = vector.shape_cast %21 : vector<8x8xf32> to vector<1x8x8xf32>
    %26 = vector.shape_cast %22 : vector<8x8xf32> to vector<1x8x8xf32>
    %27 = tpu.concatenate %23, %24, %25, %26 in 0 : vector<1x8x8xf32>, vector<1x8x8xf32>, vector<1x8x8xf32>, vector<1x8x8xf32> -> vector<4x8x8xf32>
    %28 = vector.extract_strided_slice %17 {offsets = [0, 32], sizes = [8, 32], strides = [1, 1]} : vector<8x96xf32> to vector<8x32xf32>
    %29 = vector.extract_strided_slice %28 {offsets = [0, 0], sizes = [8, 8], strides = [1, 1]} : vector<8x32xf32> to vector<8x8xf32>
    %30 = vector.extract_strided_slice %28 {offsets = [0, 8], sizes = [8, 8], strides = [1, 1]} : vector<8x32xf32> to vector<8x8xf32>
    %31 = vector.extract_strided_slice %28 {offsets = [0, 16], sizes = [8, 8], strides = [1, 1]} : vector<8x32xf32> to vector<8x8xf32>
    %32 = vector.extract_strided_slice %28 {offsets = [0, 24], sizes = [8, 8], strides = [1, 1]} : vector<8x32xf32> to vector<8x8xf32>
    %33 = vector.shape_cast %29 : vector<8x8xf32> to vector<1x8x8xf32>
    %34 = vector.shape_cast %30 : vector<8x8xf32> to vector<1x8x8xf32>
    %35 = vector.shape_cast %31 : vector<8x8xf32> to vector<1x8x8xf32>
    %36 = vector.shape_cast %32 : vector<8x8xf32> to vector<1x8x8xf32>
    %37 = tpu.concatenate %33, %34, %35, %36 in 0 : vector<1x8x8xf32>, vector<1x8x8xf32>, vector<1x8x8xf32>, vector<1x8x8xf32> -> vector<4x8x8xf32>
    %38 = vector.extract_strided_slice %17 {offsets = [0, 64], sizes = [8, 32], strides = [1, 1]} : vector<8x96xf32> to vector<8x32xf32>
    %39 = vector.extract_strided_slice %38 {offsets = [0, 0], sizes = [8, 8], strides = [1, 1]} : vector<8x32xf32> to vector<8x8xf32>
    %40 = vector.extract_strided_slice %38 {offsets = [0, 8], sizes = [8, 8], strides = [1, 1]} : vector<8x32xf32> to vector<8x8xf32>
    %41 = vector.extract_strided_slice %38 {offsets = [0, 16], sizes = [8, 8], strides = [1, 1]} : vector<8x32xf32> to vector<8x8xf32>
    %42 = vector.extract_strided_slice %38 {offsets = [0, 24], sizes = [8, 8], strides = [1, 1]} : vector<8x32xf32> to vector<8x8xf32>
    %43 = vector.shape_cast %39 : vector<8x8xf32> to vector<1x8x8xf32>
    %44 = vector.shape_cast %40 : vector<8x8xf32> to vector<1x8x8xf32>
    %45 = vector.shape_cast %41 : vector<8x8xf32> to vector<1x8x8xf32>
    %46 = vector.shape_cast %42 : vector<8x8xf32> to vector<1x8x8xf32>
    %47 = tpu.concatenate %43, %44, %45, %46 in 0 : vector<1x8x8xf32>, vector<1x8x8xf32>, vector<1x8x8xf32>, vector<1x8x8xf32> -> vector<4x8x8xf32>
    %48 = arith.truncf %47 : vector<4x8x8xf32> to vector<4x8x8xbf16>
    %c0_9 = arith.constant 0 : index
    %c0_10 = arith.constant 0 : index
    %49 = vector.load %arg7[%c0_9, %c0_10] : memref<8x8xf32, #tpu.memory_space<vmem>>, vector<8x8xf32>
    %50 = vector.shape_cast %49 : vector<8x8xf32> to vector<1x8x8xf32>
    %c0_11 = arith.constant 0 : index
    %c0_12 = arith.constant 0 : index
    %51 = vector.load %arg8[%c0_11, %c0_12] : memref<8x8xf32, #tpu.memory_space<vmem>>, vector<8x8xf32>
    %52 = vector.shape_cast %51 : vector<8x8xf32> to vector<1x8x8xf32>
    %53 = vector.extract_strided_slice %27 {offsets = [0, 0, 4], sizes = [4, 8, 4], strides = [1, 1, 1]} : vector<4x8x8xf32> to vector<4x8x4xf32>
    %cst_13 = arith.constant 0.000000e+00 : f32
    %54 = vector.broadcast %cst_13 : f32 to vector<4x8x4xf32>
    %55 = arith.subf %54, %53 : vector<4x8x4xf32>
    %56 = vector.extract_strided_slice %27 {offsets = [0, 0, 0], sizes = [4, 8, 4], strides = [1, 1, 1]} : vector<4x8x8xf32> to vector<4x8x4xf32>
    %57 = tpu.concatenate %55, %56 in 2 : vector<4x8x4xf32>, vector<4x8x4xf32> -> vector<4x8x8xf32>
    %58 = vector.broadcast %50 : vector<1x8x8xf32> to vector<4x8x8xf32>
    %59 = arith.mulf %27, %58 : vector<4x8x8xf32>
    %60 = vector.broadcast %52 : vector<1x8x8xf32> to vector<4x8x8xf32>
    %61 = arith.mulf %57, %60 : vector<4x8x8xf32>
    %62 = arith.addf %59, %61 : vector<4x8x8xf32>
    %63 = arith.truncf %62 : vector<4x8x8xf32> to vector<4x8x8xbf16>
    %64 = vector.extract_strided_slice %37 {offsets = [0, 0, 4], sizes = [4, 8, 4], strides = [1, 1, 1]} : vector<4x8x8xf32> to vector<4x8x4xf32>
    %cst_14 = arith.constant 0.000000e+00 : f32
    %65 = vector.broadcast %cst_14 : f32 to vector<4x8x4xf32>
    %66 = arith.subf %65, %64 : vector<4x8x4xf32>
    %67 = vector.extract_strided_slice %37 {offsets = [0, 0, 0], sizes = [4, 8, 4], strides = [1, 1, 1]} : vector<4x8x8xf32> to vector<4x8x4xf32>
    %68 = tpu.concatenate %66, %67 in 2 : vector<4x8x4xf32>, vector<4x8x4xf32> -> vector<4x8x8xf32>
    %69 = vector.broadcast %50 : vector<1x8x8xf32> to vector<4x8x8xf32>
    %70 = arith.mulf %37, %69 : vector<4x8x8xf32>
    %71 = vector.broadcast %52 : vector<1x8x8xf32> to vector<4x8x8xf32>
    %72 = arith.mulf %68, %71 : vector<4x8x8xf32>
    %73 = arith.addf %70, %72 : vector<4x8x8xf32>
    %74 = arith.truncf %73 : vector<4x8x8xf32> to vector<4x8x8xbf16>
    %75 = tpu.iota {dimensions = array<i32: 0>} : vector<8x8xi32>
    %76 = tpu.iota {dimensions = array<i32: 1>} : vector<8x8xi32>
    %77 = arith.cmpi sle, %76, %75 : vector<8x8xi32>
    %78 = arith.subi %75, %76 : vector<8x8xi32>
    %c4_i32 = arith.constant 4 : i32
    %79 = vector.broadcast %c4_i32 : i32 to vector<8x8xi32>
    %80 = arith.cmpi slt, %78, %79 : vector<8x8xi32>
    %81 = arith.andi %77, %80 : vector<8x8xi1>
    "tpu.trace_start"() <{level = 10 : i32, message = "hqd,hkd->hqk"}> : () -> ()
    %cst_15 = arith.constant dense<0.000000e+00> : vector<4x8x8xf32>
    %82 = tpu.matmul %63, %74, %cst_15 {dimension_numbers = #tpu.dot_dimension_numbers<[2], [2], [1], [1], [0, 0, 0, 1, 1, 1], [0], [0]>} : vector<4x8x8xbf16>, vector<4x8x8xbf16>, vector<4x8x8xf32> -> vector<4x8x8xf32>
    "tpu.trace_stop"() : () -> ()
    %83 = vector.shape_cast %81 : vector<8x8xi1> to vector<1x8x8xi1>
    %cst_16 = arith.constant -1.000000e+30 : f32
    %84 = vector.shape_cast %83 : vector<1x8x8xi1> to vector<1x8x8xi1>
    %85 = vector.broadcast %84 : vector<1x8x8xi1> to vector<4x8x8xi1>
    %86 = vector.broadcast %cst_16 : f32 to vector<4x8x8xf32>
    %87 = arith.select %85, %82, %86 : vector<4x8x8xi1>, vector<4x8x8xf32>
    %cst_17 = arith.constant dense<0xFF800000> : vector<4x8xf32>
    %88 = vector.multi_reduction <maximumf>, %87, %cst_17 [2] : vector<4x8x8xf32> to vector<4x8xf32>
    %89 = vector.shape_cast %88 : vector<4x8xf32> to vector<4x8x1xf32>
    %90 = vector.broadcast %89 : vector<4x8x1xf32> to vector<4x8x8xf32>
    %91 = arith.subf %87, %90 : vector<4x8x8xf32>
    %92 = math.exp %91 : vector<4x8x8xf32>
    %cst_18 = arith.constant dense<0.000000e+00> : vector<4x8xf32>
    %93 = vector.multi_reduction <add>, %92, %cst_18 [2] : vector<4x8x8xf32> to vector<4x8xf32>
    %94 = vector.shape_cast %93 : vector<4x8xf32> to vector<4x8x1xf32>
    %95 = tpu.reciprocal %94 {approx = true} : vector<4x8x1xf32> -> vector<4x8x1xf32>
    %96 = vector.broadcast %95 : vector<4x8x1xf32> to vector<4x8x8xf32>
    %97 = arith.mulf %92, %96 : vector<4x8x8xf32>
    %98 = arith.truncf %97 : vector<4x8x8xf32> to vector<4x8x8xbf16>
    "tpu.trace_start"() <{level = 10 : i32, message = "hqk,hkd->hqd"}> : () -> ()
    %cst_19 = arith.constant dense<0.000000e+00> : vector<4x8x8xf32>
    %99 = tpu.matmul %98, %48, %cst_19 {dimension_numbers = #tpu.dot_dimension_numbers<[2], [1], [1], [2], [0, 0, 0, 1, 1, 2], [0], [0]>} : vector<4x8x8xbf16>, vector<4x8x8xbf16>, vector<4x8x8xf32> -> vector<4x8x8xf32>
    "tpu.trace_stop"() : () -> ()
    %100 = vector.extract_strided_slice %99 {offsets = [0, 0, 0], sizes = [1, 8, 8], strides = [1, 1, 1]} : vector<4x8x8xf32> to vector<1x8x8xf32>
    %101 = vector.shape_cast %100 : vector<1x8x8xf32> to vector<8x8xf32>
    %102 = vector.extract_strided_slice %99 {offsets = [1, 0, 0], sizes = [1, 8, 8], strides = [1, 1, 1]} : vector<4x8x8xf32> to vector<1x8x8xf32>
    %103 = vector.shape_cast %102 : vector<1x8x8xf32> to vector<8x8xf32>
    %104 = vector.extract_strided_slice %99 {offsets = [2, 0, 0], sizes = [1, 8, 8], strides = [1, 1, 1]} : vector<4x8x8xf32> to vector<1x8x8xf32>
    %105 = vector.shape_cast %104 : vector<1x8x8xf32> to vector<8x8xf32>
    %106 = vector.extract_strided_slice %99 {offsets = [3, 0, 0], sizes = [1, 8, 8], strides = [1, 1, 1]} : vector<4x8x8xf32> to vector<1x8x8xf32>
    %107 = vector.shape_cast %106 : vector<1x8x8xf32> to vector<8x8xf32>
    %108 = tpu.concatenate %101, %103, %105, %107 in 1 : vector<8x8xf32>, vector<8x8xf32>, vector<8x8xf32>, vector<8x8xf32> -> vector<8x32xf32>
    %109 = arith.truncf %108 : vector<8x32xf32> to vector<8x32xbf16>
    %c0_20 = arith.constant 0 : index
    %c0_21 = arith.constant 0 : index
    %110 = vector.load %arg5[%c0_20, %c0_21] : memref<32x32xbf16, #tpu.memory_space<vmem>>, vector<32x32xbf16>
    %cst_22 = arith.constant dense<0.000000e+00> : vector<8x32xf32>
    %111 = tpu.matmul %109, %110, %cst_22 {dimension_numbers = #tpu.dot_dimension_numbers<[1], [0], [0], [1], [0, 0, 1, 1], [], []>} : vector<8x32xbf16>, vector<32x32xbf16>, vector<8x32xf32> -> vector<8x32xf32>
    %112 = arith.addf %1, %111 : vector<8x32xf32>
    %c0_23 = arith.constant 0 : index
    %c0_24 = arith.constant 0 : index
    %c0_25 = arith.constant 0 : index
    %113 = vector.load %arg9[%c0_23, %c0_24, %c0_25] : memref<1x8x32xf32, #tpu.memory_space<vmem>>, vector<1x8x32xf32>
    %114 = vector.shape_cast %113 : vector<1x8x32xf32> to vector<8x32xf32>
    %115 = vector.shape_cast %112 : vector<8x32xf32> to vector<1x8x32xf32>
    tpu.vector_store %arg9[%c0_23, %c0_24, %c0_25], %115 {strides = array<i32>} : memref<1x8x32xf32, #tpu.memory_space<vmem>>, vector<1x8x32xf32>,
    %c0_26 = arith.constant 0 : index
    %c0_27 = arith.constant 0 : index
    %116 = vector.load %arg3[%c0_26, %c0_27] : memref<1x32xf32, #tpu.memory_space<vmem>>, vector<1x32xf32>
    %117 = arith.mulf %112, %112 : vector<8x32xf32>
    %cst_28 = arith.constant dense<0.000000e+00> : vector<8xf32>
    %118 = vector.multi_reduction <add>, %117, %cst_28 [1] : vector<8x32xf32> to vector<8xf32>
    %119 = vector.shape_cast %118 : vector<8xf32> to vector<8x1xf32>
    %cst_29 = arith.constant 3.200000e+01 : f32
    %120 = vector.broadcast %cst_29 : f32 to vector<8x1xf32>
    %121 = arith.divf %119, %120 : vector<8x1xf32>
    %cst_30 = arith.constant 9.99999974E-6 : f32
    %122 = vector.broadcast %cst_30 : f32 to vector<8x1xf32>
    %123 = arith.addf %121, %122 : vector<8x1xf32>
    %124 = math.rsqrt %123 : vector<8x1xf32>
    %125 = vector.broadcast %124 : vector<8x1xf32> to vector<8x32xf32>
    %126 = arith.mulf %112, %125 : vector<8x32xf32>
    %127 = vector.broadcast %116 : vector<1x32xf32> to vector<8x32xf32>
    %128 = arith.mulf %126, %127 : vector<8x32xf32>
    %129 = arith.truncf %128 : vector<8x32xf32> to vector<8x32xbf16>
    %c0_31 = arith.constant 0 : index
    %c0_32 = arith.constant 0 : index
    %130 = vector.load %arg6[%c0_31, %c0_32] : memref<32x4xbf16, #tpu.memory_space<vmem>>, vector<32x4xbf16>
    %cst_33 = arith.constant dense<0.000000e+00> : vector<8x4xf32>
    %131 = tpu.matmul %129, %130, %cst_33 {dimension_numbers = #tpu.dot_dimension_numbers<[1], [0], [0], [1], [0, 0, 1, 1], [], []>} : vector<8x32xbf16>, vector<32x4xbf16>, vector<8x4xf32> -> vector<8x4xf32>
    %c0_34 = arith.constant 0 : index
    %c0_35 = arith.constant 0 : index
    %c0_36 = arith.constant 0 : index
    %132 = vector.load %arg10[%c0_34, %c0_35, %c0_36] : memref<1x8x4xf32, #tpu.memory_space<vmem>>, vector<1x8x4xf32>
    %133 = vector.shape_cast %132 : vector<1x8x4xf32> to vector<8x4xf32>
    %134 = vector.shape_cast %131 : vector<8x4xf32> to vector<1x8x4xf32>
    tpu.vector_store %arg10[%c0_34, %c0_35, %c0_36], %134 {strides = array<i32>} : memref<1x8x4xf32, #tpu.memory_space<vmem>>, vector<1x8x4xf32>,
    return
  }
  func.func @transform_0(%arg0: i32) -> (i32, i32, i32) {
    %c0_i32 = arith.constant 0 : i32
    %c0_i32_0 = arith.constant 0 : i32
    %c0_i32_1 = arith.constant 0 : i32
    return %arg0, %c0_i32, %c0_i32_0 : i32, i32, i32
  }
  func.func @transform_1(%arg0: i32) -> (i32, i32) {
    %c0_i32 = arith.constant 0 : i32
    %c0_i32_0 = arith.constant 0 : i32
    %c0_i32_1 = arith.constant 0 : i32
    return %c0_i32, %c0_i32_0 : i32, i32
  }
  func.func @transform_2(%arg0: i32) -> (i32, i32) {
    %c0_i32 = arith.constant 0 : i32
    %c0_i32_0 = arith.constant 0 : i32
    %c0_i32_1 = arith.constant 0 : i32
    return %c0_i32, %c0_i32_0 : i32, i32
  }
  func.func @transform_3(%arg0: i32) -> (i32, i32) {
    %c0_i32 = arith.constant 0 : i32
    %c0_i32_0 = arith.constant 0 : i32
    %c0_i32_1 = arith.constant 0 : i32
    return %c0_i32, %c0_i32_0 : i32, i32
  }
  func.func @transform_4(%arg0: i32) -> (i32, i32) {
    %c0_i32 = arith.constant 0 : i32
    %c0_i32_0 = arith.constant 0 : i32
    %c0_i32_1 = arith.constant 0 : i32
    return %c0_i32, %c0_i32_0 : i32, i32
  }
  func.func @transform_5(%arg0: i32) -> (i32, i32) {
    %c0_i32 = arith.constant 0 : i32
    %c0_i32_0 = arith.constant 0 : i32
    %c0_i32_1 = arith.constant 0 : i32
    return %c0_i32, %c0_i32_0 : i32, i32
  }
  func.func @transform_6(%arg0: i32) -> (i32, i32) {
    %c0_i32 = arith.constant 0 : i32
    %c0_i32_0 = arith.constant 0 : i32
    %c0_i32_1 = arith.constant 0 : i32
    return %c0_i32, %c0_i32_0 : i32, i32
  }
  func.func @transform_7(%arg0: i32) -> (i32, i32) {
    %c0_i32 = arith.constant 0 : i32
    %c0_i32_0 = arith.constant 0 : i32
    %c0_i32_1 = arith.constant 0 : i32
    return %c0_i32, %c0_i32_0 : i32, i32
  }
  func.func @transform_8(%arg0: i32) -> (i32, i32, i32) {
    %c0_i32 = arith.constant 0 : i32
    %c0_i32_0 = arith.constant 0 : i32
    %c0_i32_1 = arith.constant 0 : i32
    return %arg0, %c0_i32, %c0_i32_0 : i32, i32, i32
  }
  func.func @transform_9(%arg0: i32) -> (i32, i32, i32) {
    %c0_i32 = arith.constant 0 : i32
    %c0_i32_0 = arith.constant 0 : i32
    %c0_i32_1 = arith.constant 0 : i32
    return %arg0, %c0_i32, %c0_i32_0 : i32, i32, i32
  }
}

</mosaic_0001>

<bundles_post_ra>
// kernel: tpu_custom_call.1
= control target key start
LH: loop header
LB: loop body
LE: loop exit
PB: predicated region body
PF: predicated region fallthrough
CT: control target
= control target key end

     0   :  { %s2281_s0 = inlined_call_operand.vmem [shape: f32[2,8,32], index: 0, kind: input, shape index: {}]   ;;  %s2282_s1 = inlined_call_operand.hbm [shape: f32[1,32], index: 1, kind: input, shape index: {}]   ;;  %s2283_s2 = inlined_call_operand.hbm [shape: f32[1,32], index: 2, kind: input, shape index: {}]   ;;  %s2284_s3 = inlined_call_operand.hbm [shape: bf16[32,96], index: 3, kind: input, shape index: {}]   ;;  %s2285_s4 = inlined_call_operand.vmem [shape: bf16[32,32], index: 4, kind: input, shape index: {}]   ;;  %s2286_s5 = inlined_call_operand.vmem [shape: bf16[32,4], index: 5, kind: input, shape index: {}]   ;;  %s2287_s6 = inlined_call_operand.vmem [shape: f32[8,8], index: 6, kind: input, shape index: {}]   ;;  %s2288_s7 = inlined_call_operand.hbm [shape: f32[8,8], index: 7, kind: input, shape index: {}]   ;;  %s2289_s8 = inlined_call_operand.hbm [shape: f32[2,8,32], index: 8, kind: output, shape index: {0}]   ;;  %s2290_s9 = inlined_call_operand.vmem [shape: f32[2,8,4], index: 9, kind: output, shape index: {1}]  }
   0x1   :  { %2297 = sst [smem:[#allocation18_spill]] %s2282_s1 }
   0x2   :  { %2298 = sst [smem:[#allocation19_spill]] %s2283_s2 }
   0x3   :  { %15 = vsyncpa [#allocation3], 0 }
   0x4   :  { %16 = vsyncpa [#allocation6], 0 }
   0x5   :  { %17 = vsyncpa [#allocation9], 0 }
   0x6   :  { %18 = vsyncpa [#allocation4], 0 }
   0x7   :  { %20 = vsyncpa [#allocation4 + $0x1], 0  ;;  %s1880_s30 = smov 0   ;;  %s1882_s10 = smov 0  }
   0x8   :  { %s1884_s11 = smov 0   ;;  %s1886_s12 = smov 0  }
   0x9 LB: > { %2299 = sst [smem:[#allocation15_spill]] %s1802_s11  ;;  %s1901_s13 = sadd.s32 4294967295, %s1806_s12   ;;  %s1806_s12 = sphi %s1886_s12, %s2320_s12   ;;  %s1802_s11 = sphi %s1884_s11, %s2322_s11   ;;  %s1798_s10 = sphi %s1882_s10, %s2324_s10   ;;  %s1794_s30 = sphi %s1880_s30, %s2323_s30  }
   0xa   : > { %s1362_s14 = sadd.s32 4294967294, %s1806_s12   ;;  %s1905_s15 = sadd.s32 1, %s1806_s12  }
   0xb   : > { %2300 = sst [smem:[#allocation16_spill]] %s1905_s15  ;;  %s206_s16 = sadd.s32 1, %s1802_s11 }
   0xc   : > { %s203_s17 = ssub.s32 %s1806_s12, %s1905_s15  ;;  %p216_p0 = scmp.ne.s32.totalorder %s1802_s11, %s1798_s10 }
   0xd   : > { %p204_p1 = scmp.eq.s32.totalorder %s203_s17, 0  ;;  %p217_p2 = scmp.eq.s32.totalorder %s1901_s13, 1 }
   0xe   : > { %p222_p3 = scmp.ne.s32.totalorder %s1798_s10, %s1794_s30  ;;  %p223_p4 = scmp.eq.s32.totalorder %s1362_s14, 1 }
   0xf   : > { %s1916_s18 = scalar_select %p204_p1, %s1802_s11, %s206_s16  }
  0x10   : > { %p1918_p5 = por %p217_p2, %p216_p0  ;;  %p1922_p6 = por %p223_p4, %p222_p3 }
  0x11   : > { %2301 = sst [smem:[#allocation17_spill]] %s1916_s18  ;;  %p1363_p7 = scmp.ge.s32.totalorder %s1806_s12, 1 }
  0x12   : > { %s2302_s19 = scalar_select %p1918_p5, 1, 0 }
  0x13   : > { %s2303_s20 = scalar_select %p1922_p6, 1, 0 }
  0x14   : > { %p256_p8 = scmp.lt.s32.totalorder %s1806_s12, 3  ;;  %p2291_p9 = scmp.eq.s32.totalorder %s1901_s13, 0 }
  0x15   : > { %s1808_s22 = smov [#allocation5]   ;;  %s1809_s24 = smov [#allocation2]  }
  0x16   : > { %p1929_p10 = pnand %p1363_p7, %p256_p8  ;;  %s280_s23 = sshll.u32 %s1808_s22, 4  ;;  %s281_s23 = int_to_ptr.vmem [resolvable:$true] %s280_s23 }
  0x17   : > { %s269_s25 = sshll.u32 %s1809_s24, 4  ;;  %s1810_s27 = smov [#allocation7]   ;;  %s1941_s25 = int_to_ptr.vmem [resolvable:$true] %s269_s25 }
  0x18   : > { %s2304_s21 = scalar_select %p1929_p10, 1, 0 }
  0x19   : > { %p1515_p11 = pneg %p1929_p10  ;;  %s290_s28 = sshll.u32 %s1810_s27, 4  ;;  %s1943_s28 = int_to_ptr.vmem [resolvable:$true] %s290_s28 }
  0x1a   : > { %s2306_s2 = sld [smem:[#allocation19_spill]] }
  0x1b   : > { %p1937_p12 = pnand %p2291_p9, %p1515_p11 }
  0x1d   : > { %p1953_p0 = pneg %p1937_p12 }
  0x20   : > { %s1620_s16 = scalar_lea.hbm %s2306_s2, 16 }
  0x21   : > { %p1621_p13 = scmp.ne.s32.totalorder %s2306_s2, %s1620_s16  ;;  %p1627_p3 = scmp.lt.u32.totalorder %s1620_s16, %s2306_s2 }
  0x23   : > { %p1623_p1 = pnand %p1953_p0, %p1621_p13 }
  0x25   : > { %p1624_p2 = pneg %p1623_p1 }
  0x27   : > { %p1629_p4 = pnand %p1627_p3, %p1624_p2 }
  0x29   : > { %1632 = shalt.err (!%p1629_p4)
}
  0x2a   : > { %s1633_s29 = scalar_lea.vmem %s281_s23, 16  ;;  %s1640_s14 = scalar_lea.vmem %s281_s23, 32 }
  0x2b   : > { %p1634_p7 = scmp.ne.s32.totalorder %s281_s23, %s1633_s29  ;;  %p1641_p9 = scmp.lt.s32.totalorder %s281_s23, %s281_s23 }
  0x2c   : > { %p1642_p6 = scmp.lt.s32.totalorder %s1640_s14, %s1633_s29 }
  0x2d   : > { %p1636_p8 = pnand %p1634_p7, %p1953_p0 }
  0x2e   : > { %p1643_p5 = por %p1642_p6, %p1641_p9 }
  0x2f   : > { %p1637_p11 = pneg %p1636_p8 }
  0x31   : > { %p1644_p10 = pnand %p1643_p5, %p1637_p11 }
  0x33   : > { %1647 = shalt.err (!%p1644_p10)
}
  0x34   : > { %1521 = dma.hbm_to_vmem [thread:$0]  (!%p1937_p12), %s2306_s2, 16, %s281_s23, [#allocation6]  }
  0x35   : > { %s2308_s1 = sld [smem:[#allocation18_spill]] }
  0x3b   : > { %s1648_s27 = scalar_lea.hbm %s2308_s1, 16 }
  0x3c   : > { %p1649_p13 = scmp.ne.s32.totalorder %s2308_s1, %s1648_s27  ;;  %p1655_p5 = scmp.lt.u32.totalorder %s1648_s27, %s2308_s1 }
  0x3e   : > { %p1651_p1 = pnand %p1649_p13, %p1953_p0 }
  0x40   : > { %p1652_p6 = pneg %p1651_p1 }
  0x42   : > { %p1657_p9 = pnand %p1655_p5, %p1652_p6 }
  0x44   : > { %1660 = shalt.err (!%p1657_p9)
}
  0x45   : > { %s1661_s23 = scalar_lea.vmem %s1941_s25, 16  ;;  %s1668_s11 = scalar_lea.vmem %s1941_s25, 32 }
  0x46   : > { %p1662_p10 = scmp.ne.s32.totalorder %s1941_s25, %s1661_s23  ;;  %p1669_p4 = scmp.lt.s32.totalorder %s1941_s25, %s1941_s25 }
  0x47   : > { %p1670_p7 = scmp.lt.s32.totalorder %s1668_s11, %s1661_s23 }
  0x48   : > { %p1664_p2 = pnand %p1662_p10, %p1953_p0 }
  0x49   : > { %p1671_p8 = por %p1670_p7, %p1669_p4 }
  0x4a   : > { %p1665_p3 = pneg %p1664_p2 }
  0x4c   : > { %p1672_p11 = pnand %p1671_p8, %p1665_p3 }
  0x4e   : > { %1675 = shalt.err (!%p1672_p11)
}
  0x4f   : > { %1518 = dma.hbm_to_vmem [thread:$0]  (!%p1937_p12), %s2308_s1, 16, %s1941_s25, [#allocation3]  }
  0x50   : > { %s1676_s16 = scalar_lea.hbm %s2284_s3, 256 }
  0x51   : > { %p1677_p13 = scmp.ne.s32.totalorder %s2284_s3, %s1676_s16  ;;  %p1683_p5 = scmp.lt.u32.totalorder %s1676_s16, %s2284_s3 }
  0x53   : > { %p1679_p1 = pnand %p1677_p13, %p1953_p0 }
  0x55   : > { %p1680_p6 = pneg %p1679_p1 }
  0x57   : > { %p1685_p9 = pnand %p1683_p5, %p1680_p6 }
  0x59   : > { %1688 = shalt.err (!%p1685_p9)
}
  0x5a   : > { %s1689_s25 = scalar_lea.vmem %s1943_s28, 256  ;;  %p1697_p4 = scmp.lt.s32.totalorder %s1943_s28, %s1943_s28 }
  0x5b   : > { %p1690_p10 = scmp.ne.s32.totalorder %s1943_s28, %s1689_s25  ;;  %p1698_p7 = scmp.lt.s32.totalorder %s1689_s25, %s1689_s25 }
  0x5d   : > { %p1692_p2 = pnand %p1690_p10, %p1953_p0  ;;  %p1699_p8 = por %p1698_p7, %p1697_p4 }
  0x5f   : > { %p1693_p3 = pneg %p1692_p2 }
  0x61   : > { %p1700_p11 = pnand %p1699_p8, %p1693_p3 }
  0x63   : > { %1703 = shalt.err (!%p1700_p11)
}
  0x64   : > { %s1811_s11 = smov 64   ;;  %s1812_s15 = smov 4  }
  0x65   : > { %1524 = dma.hbm_to_vmem [thread:$0]  (!%p1937_p12), %s2284_s3, 256, %s1943_s28, [#allocation6], %s1811_s11, %s1811_s11, %s1812_s15  }
  0x66   : > { %s1813_s18 = smov [#allocation8]   ;;  %s1704_s14 = scalar_lea.hbm %s2288_s7, 128 }
  0x67   : > { %s313_s16 = sshll.u32 %s1813_s18, 4  ;;  %p1705_p13 = scmp.ne.s32.totalorder %s2288_s7, %s1704_s14  ;;  %s314_s16 = int_to_ptr.vmem [resolvable:$true] %s313_s16 }
  0x68   : > { %p1711_p5 = scmp.lt.u32.totalorder %s1704_s14, %s2288_s7 }
  0x69   : > { %p1707_p1 = pnand %p1705_p13, %p1953_p0 }
  0x6b   : > { %p1708_p6 = pneg %p1707_p1 }
  0x6d   : > { %p1713_p9 = pnand %p1711_p5, %p1708_p6 }
  0x6f   : > { %1716 = shalt.err (!%p1713_p9)
}
  0x70   : > { %s1717_s28 = scalar_lea.vmem %s314_s16, 128  ;;  %p1725_p4 = scmp.lt.s32.totalorder %s314_s16, %s314_s16 }
  0x71   : > { %p1718_p10 = scmp.ne.s32.totalorder %s314_s16, %s1717_s28  ;;  %p1726_p7 = scmp.lt.s32.totalorder %s1717_s28, %s1717_s28 }
  0x73   : > { %p1720_p2 = pnand %p1718_p10, %p1953_p0  ;;  %p1727_p8 = por %p1726_p7, %p1725_p4 }
  0x75   : > { %p1721_p3 = pneg %p1720_p2 }
  0x77   : > { %p1728_p11 = pnand %p1727_p8, %p1721_p3 }
  0x79   : > { %1731 = shalt.err (!%p1728_p11)
}
  0x7a   : > { %1527 = dma.hbm_to_vmem [thread:$0]  (!%p1937_p12), %s2288_s7, 128, %s314_s16, [#allocation9]  }
  0x7b   : > { %p2309_p13 = scmp.ne.s32.totalorder %s2304_s21, 0 }
  0x7c   : > { %p2310_p1 = scmp.eq.s32.totalorder (!%p2309_p13), %s1901_s13, 0 }
  0x7d   : > { %333 = sbr.rel (%p2309_p13) target bundleno = 2470 (0x9a6), region = 52 }
  0x84   : > { %1777 = dma.done.wait (%p2310_p1), [#allocation3], 16   ;;  %p2311_p0 = pmov %p2310_p1 }
  0x86   : > { %1779 = vsyncadd (%p2311_p0), [#allocation3], 4294967280  ;;  %p2312_p6 = pmov %p2311_p0 }
  0x87   : > { %p2313_p5 = pmov %p2311_p0 }
  0x88   : > { %1781 = dma.done.wait (%p2312_p6), [#allocation6], 272  }
  0x89   : > { %1783 = vsyncadd (%p2313_p5), [#allocation6], 4294967024  ;;  %p2314_p9 = pmov %p2311_p0 }
  0x8a   : > { %p2315_p12 = pmov %p2311_p0 }
  0x8b   : > { %1785 = dma.done.wait (%p2314_p9), [#allocation9], 128  }
  0x8c   : > { %1787 = vsyncadd (%p2315_p12), [#allocation9], 4294967168  ;;  %p384_p10 = scmp.lt.s32.totalorder %s1901_s13, 1  ;;  %vm396_vm0 = vcmask 261120   ;;  %v1594_v3 = vld [vmem:[#allocation7] sm:$0xff]   ;;  %v1814_v4 = vmov 0.0  }
  0x8d   : > { %1425 = vmatprep.subr.bf16.mxu0 %v1814_v4  ;;  %vm1815_vm1 = vmmov 0   ;;  %v1595_v5 = vld [vmem:[#allocation7 + $0x8] sm:$0xff]   ;;  %1433 = vmatprep.subr.bf16.mxu1 %v1814_v4  ;;  %v1377_v10 = vld [vmem:[#allocation2] ss:$0 sm:$0xff]  ;;  %s1816_s17 = smov 112   ;;  %s1817_s22 = smov 120  }
  0x8e   : > { %s2050_s1 = scalar_select %p384_p10, %s1901_s13, 1  ;;  %1429 = vmatprep.mubr.msk.bf16.mxu0 %vm1815_vm1, %v1814_v4  ;;  %1426 = vmatpush3.bf16.msra.mxu0 %v1594_v3  ;;  %vm520_vm2 = vcmask 31744   ;;  %v2093_v25 = vld [vmem:[#allocation8] sm:$0xff]  ;;  %v2101_v30 = vld [vmem:[%s2287_s6] sm:$0xff]  ;;  %vm616_vm3 = vcmask 64512   ;;  %vm870_vm7 = vcmask 1043456  }
  0x8f   : > { %1427 = vmatprep.subr.bf16.mxu0 %v1814_v4  ;;  %1435 = vmatprep.mubr.msk.bf16.mxu1 %vm1815_vm1, %v1814_v4  ;;  %s1818_s18 = smov 104   ;;  %s1819_s16 = smov 100   ;;  %vm1074_vm8 = vcmask 130048   ;;  %vm1076_vm9 = vcmask 195584  }
  0x90   : > { %s1375_s2 = sshll.u32 %s2050_s1, 3  ;;  %s1820_s27 = smov 92  }
  0x91   : > { %s387_s24 = scalar_lea.vmem %s2281_s0, %s1375_s2  ;;  %s1821_s29 = smov 32  }
  0x92   : > { %v2058_v0 = vld [vmem:[%s387_s24] sm:$0xff]  ;;  %1428 = vmatpush3.bf16.msra.mxu0 %v1595_v5  ;;  %s1822_s25 = smov 4   ;;  %s1823_s28 = smov 124  }
  0x93   : > { %v395_v1 = vmul.f32 %v2058_v0, %v2058_v0  ;;  %1439 = vmatprep.subr.bf16.mxu0 %v1814_v4  ;;  %s1824_s11 = smov 96   ;;  %s1825_s15 = smov 64  }
  0x94   : > { %p2318_p3 = scmp.ne.s32.totalorder %s2302_s19, 0 }
  0x95   : > { %v397_v2 = vsel %vm396_vm0, %v395_v1, 0.0 }
  0x96   : > { %398 = vadd.xlane.f32.xlu0 %v397_v2 }
 0x123   : > { %v399_v6 = vpop.xlane.xlu0 %398 }
 0x124   : > { %v401_v7 = vmul.f32 0.03125, %v399_v6 }
 0x126   : > { %v402_v8 = vadd.f32 1e-05, %v401_v7 }
 0x128   : > { %1600 = vrsqrt.f32 %v402_v8 }
 0x132   : > { %v1601_v9 = vpop.eup %1600 }
 0x133   : > { %v404_v11 = vmul.f32 %v1601_v9, %v2058_v0 }
 0x135   : > { %v411_v12 = vmul.f32 %v1377_v10, %v404_v11 }
 0x137   : > { %v412_v13 = vpack.c.bf16 %v411_v12, %v411_v12 }
 0x139   : > { %1430 = vmatmul.mubr.msk.bf16.vlgmr.msra.gmra.mrb[0].mxu0 %vm396_vm0, %v412_v13 }
 0x13a   : > { %1441 = vmatprep.mubr.msk.bf16.mxu0 %vm1815_vm1, %v1814_v4 }
 0x20c   : > { %v2075_v14 = vpop.f32.mrb[0].mxu0 }
 0x20d   : > { %476 = vrot.lane.b32.xlu1 %v2075_v14, %s1816_s17  ;;  %473 = vrot.lane.b32.xlu0 %v2075_v14, %s1817_s22  ;;  %v1431_v15 = vpop.f32.mrb[1].mxu0  ;;  %v488_v18 = vsub.f32 0.0, %v2075_v14  ;;  %v525_v3 = vmul.f32 %v2101_v30, %v2075_v14  ;;  %s1826_s22 = smov 16  }
 0x20e   : > { %v469_v16 = vpop.f32.mrb[2].mxu0 }
 0x20f   : > { %v1432_v17 = vpop.f32.mrb[3].mxu0 }
 0x211   : > { %479 = vrot.lane.b32.xlu1 %v2075_v14, %s1818_s18  ;;  %s1827_s18 = smov 8  }
 0x215   : > { %553 = vrot.lane.b32.xlu1 %v2075_v14, %s1819_s16 }
 0x219   : > { %541 = vrot.lane.b32.xlu1 %v488_v18, %s1820_s27 }
 0x27f   : > { %v2082_v19 = vpop.permute.xlu1 %476  ;;  %v2084_v20 = vpop.permute.xlu0 %473 }
 0x280   : > { %557 = vrot.lane.b32.xlu0 %v2082_v19, %s1819_s16  ;;  %555 = vrot.lane.b32.xlu1 %v2084_v20, %s1819_s16  ;;  %v489_v21 = vsub.f32 0.0, %v2084_v20  ;;  %v490_v23 = vsub.f32 0.0, %v2082_v19  ;;  %v526_v13 = vmul.f32 %v2101_v30, %v2084_v20 }
 0x283   : > { %v2089_v22 = vpop.permute.xlu1 %479 }
 0x284   : > { %559 = vrot.lane.b32.xlu0 %v2089_v22, %s1819_s16  ;;  %543 = vrot.lane.b32.xlu1 %v489_v21, %s1820_s27  ;;  %v491_v26 = vsub.f32 0.0, %v2089_v22  ;;  %s1828_s16 = smov 24  }
 0x287   : > { %v554_v24 = vpop.permute.xlu1 %553 }
 0x288   : > { %545 = vrot.lane.b32.xlu1 %v490_v23, %s1820_s27 }
 0x28b   : > { %v542_v27 = vpop.permute.xlu1 %541 }
 0x28c   : > { %v565_v28 = vsel %vm520_vm2, %v542_v27, %v554_v24  ;;  %547 = vrot.lane.b32.xlu1 %v491_v26, %s1820_s27  ;;  %v527_v24 = vmul.f32 %v2101_v30, %v2082_v19  ;;  %s375_s27 = sand.u32 1, %s1798_s10  }
 0x28d   : > { %v577_v29 = vmul.f32 %v565_v28, %v2093_v25 }
 0x28f   : > { %585 = vrot.lane.b32.xlu0 %v577_v29, %s1821_s29 }
 0x290   : > { %570 = vrot.lane.b32.xlu1 %v2101_v30, %s1821_s29 }
 0x2f2   : > { %v556_v31 = vpop.permute.xlu1 %555  ;;  %v558_v34 = vpop.permute.xlu0 %557 }
 0x2f6   : > { %v544_v32 = vpop.permute.xlu1 %543  ;;  %v560_v39 = vpop.permute.xlu0 %559 }
 0x2f7   : > { %v566_v33 = vsel %vm520_vm2, %v544_v32, %v556_v31 }
 0x2f8   : > { %v578_v35 = vmul.f32 %v566_v33, %v2093_v25 }
 0x2fa   : > { %587 = vrot.lane.b32.xlu1 %v578_v35, %s1821_s29  ;;  %v546_v36 = vpop.permute.xlu1 %545 }
 0x2fb   : > { %v567_v37 = vsel %vm520_vm2, %v546_v36, %v558_v34  ;;  %v528_v36 = vmul.f32 %v2101_v30, %v2089_v22 }
 0x2fc   : > { %v579_v38 = vmul.f32 %v567_v37, %v2093_v25 }
 0x2fe   : > { %589 = vrot.lane.b32.xlu0 %v579_v38, %s1821_s29  ;;  %v548_v40 = vpop.permute.xlu1 %547 }
 0x2ff   : > { %v568_v41 = vsel %vm520_vm2, %v548_v40, %v560_v39  ;;  %v605_v40 = vlaneseq }
 0x300   : > { %v580_v42 = vmul.f32 %v568_v41, %v2093_v25 }
 0x301   : > { %v586_v45 = vpop.permute.xlu0 %585  ;;  %v606_v41 = vshrl.u32 %v605_v40, 7 }
 0x302   : > { %508 = vrot.lane.b32.xlu0 %v2075_v14, %s1822_s25  ;;  %591 = vrot.lane.b32.xlu1 %v580_v42, %s1821_s29  ;;  %v571_v43 = vpop.permute.xlu1 %570  ;;  %v608_v42 = vand.u32 127, %v605_v40  ;;  %s1374_s29 = sshll.u32 %s375_s27, 3 }
 0x303   : > { %v573_v44 = vmul.f32 %v571_v43, %v2075_v14  ;;  %v574_v48 = vmul.f32 %v571_v43, %v2084_v20  ;;  %v575_v52 = vmul.f32 %v571_v43, %v2082_v19  ;;  %v576_v56 = vmul.f32 %v571_v43, %v2089_v22  ;;  %s377_s14 = scalar_lea.vmem [#allocation10], %s1374_s29 }
 0x304   : > { %v610_v43 = vsub.s32 %v606_v41, %v608_v42  ;;  %vm609_vm4 = vcmp.le.s32.totalorder %v608_v42, %v606_v41  ;;  %s1235_s21 = sshll.u32 %s377_s14, 4  ;;  %s1236_s21 = int_to_ptr.vmem [resolvable:$true] %s1235_s21 }
 0x305   : > { %v597_v46 = vadd.f32 %v586_v45, %v573_v44 }
 0x306   : > { %498 = vrot.lane.b32.xlu0 %v489_v21, %s1823_s28  ;;  %496 = vrot.lane.b32.xlu1 %v488_v18, %s1823_s28  ;;  %vm611_vm5 = vcmp.lt.s32.totalorder %v610_v43, 4 }
 0x307   : > { %v601_v47 = vpack.c.bf16 %v597_v46, %v597_v46  ;;  %vm2158_vm6 = vmand %vm609_vm4, %vm611_vm5 }
 0x30a   : > { %510 = vrot.lane.b32.xlu1 %v2084_v20, %s1822_s25  ;;  %614 = vrot.lane.b32.xlu0 %v601_v47, %s1824_s11 }
 0x30e   : > { %512 = vrot.lane.b32.xlu0 %v2082_v19, %s1822_s25 }
 0x36c   : > { %v588_v49 = vpop.permute.xlu1 %587 }
 0x36d   : > { %v598_v50 = vadd.f32 %v588_v49, %v574_v48 }
 0x36f   : > { %v602_v51 = vpack.c.bf16 %v598_v50, %v598_v50 }
 0x370   : > { %v590_v53 = vpop.permute.xlu0 %589 }
 0x371   : > { %v599_v54 = vadd.f32 %v590_v53, %v575_v52  ;;  %664 = vrot.lane.b32.xlu1 %v602_v51, %s1824_s11 }
 0x373   : > { %v603_v55 = vpack.c.bf16 %v599_v54, %v599_v54 }
 0x374   : > { %v509_v57 = vpop.permute.xlu0 %508  ;;  %v592_v58 = vpop.permute.xlu1 %591 }
 0x375   : > { %v600_v59 = vadd.f32 %v592_v58, %v576_v56  ;;  %713 = vrot.lane.b32.xlu0 %v603_v55, %s1824_s11  ;;  %500 = vrot.lane.b32.xlu1 %v490_v23, %s1823_s28 }
 0x377   : > { %v604_v60 = vpack.c.bf16 %v600_v59, %v600_v59 }
 0x378   : > { %v499_v61 = vpop.permute.xlu0 %498  ;;  %v497_v62 = vpop.permute.xlu1 %496 }
 0x379   : > { %v521_v63 = vsel %vm520_vm2, %v497_v62, %v509_v57  ;;  %502 = vrot.lane.b32.xlu0 %v491_v26, %s1823_s28  ;;  %762 = vrot.lane.b32.xlu1 %v604_v60, %s1824_s11 }
 0x37a   : > { %v529_v1 = vmul.f32 %v521_v63, %v2093_v25 }
 0x37c   : > { %v615_v2 = vpop.permute.xlu0 %614  ;;  %v533_v6 = vadd.f32 %v529_v1, %v525_v3  ;;  %v511_v8 = vpop.permute.xlu1 %510 }
 0x37d   : > { %514 = vrot.lane.b32.xlu1 %v2089_v22, %s1822_s25  ;;  %v621_v5 = vsel %vm616_vm3, %v615_v2, 0  ;;  %v522_v9 = vsel %vm520_vm2, %v499_v61, %v511_v8 }
 0x37e   : > { %1434 = vmatpush3.bf16.xpose.msra.mxu1 %v621_v5  ;;  %v537_v7 = vpack.c.bf16 %v533_v6, %v533_v6  ;;  %v530_v10 = vmul.f32 %v522_v9, %v2093_v25  ;;  %v482_v5 = vpack.c.bf16 %v2075_v14, %v2075_v14 }
 0x37f   : > { %1445 = vmatprep.subr.bf16.mxu1 %v1814_v4 }
 0x380   : > { %v513_v11 = vpop.permute.xlu0 %512  ;;  %v534_v16 = vadd.f32 %v530_v10, %v526_v13 }
 0x382   : > { %v538_v27 = vpack.c.bf16 %v534_v16, %v534_v16 }
 0x385   : > { %1436 = vmatmul.mubr.msk.bf16.vlgmr.msra.gmra.mrb[0].mxu1 %vm616_vm3, %v537_v7 }
 0x386   : > { %1447 = vmatprep.mubr.msk.bf16.mxu1 %vm1815_vm1, %v1814_v4 }
 0x3e3   : > { %v665_v12 = vpop.permute.xlu1 %664 }
 0x3e4   : > { %v670_v15 = vsel %vm616_vm3, %v665_v12, 0 }
 0x3e5   : > { %1440 = vmatpush3.bf16.xpose.msra.mxu0 %v670_v15 }
 0x3e6   : > { %1451 = vmatprep.subr.bf16.mxu0 %v1814_v4 }
 0x3e7   : > { %v714_v17 = vpop.permute.xlu0 %713  ;;  %v501_v18 = vpop.permute.xlu1 %500 }
 0x3e8   : > { %v719_v21 = vsel %vm616_vm3, %v714_v17, 0  ;;  %v523_v23 = vsel %vm520_vm2, %v501_v18, %v513_v11 }
 0x3e9   : > { %v531_v26 = vmul.f32 %v523_v23, %v2093_v25  ;;  %1446 = vmatpush3.bf16.xpose.msra.mxu1 %v719_v21 }
 0x3ea   : > { %1457 = vmatprep.subr.bf16.mxu1 %v1814_v4 }
 0x3eb   : > { %v535_v28 = vadd.f32 %v531_v26, %v527_v24  ;;  %v763_v29 = vpop.permute.xlu1 %762  ;;  %v503_v33 = vpop.permute.xlu0 %502 }
 0x3ec   : > { %v768_v31 = vsel %vm616_vm3, %v763_v29, 0  ;;  %1442 = vmatmul.mubr.msk.bf16.vlgmr.msra.gmra.mrb[4].mxu0 %vm616_vm3, %v538_v27 }
 0x3ed   : > { %v539_v32 = vpack.c.bf16 %v535_v28, %v535_v28  ;;  %1452 = vmatpush3.bf16.xpose.msra.mxu0 %v768_v31  ;;  %1453 = vmatprep.mubr.msk.bf16.mxu0 %vm1815_vm1, %v1814_v4 }
 0x3ee   : > { %1463 = vmatprep.subr.bf16.mxu0 %v1814_v4 }
 0x3ef   : > { %v515_v34 = vpop.permute.xlu1 %514 }
 0x3f0   : > { %v524_v35 = vsel %vm520_vm2, %v503_v33, %v515_v34  ;;  %1448 = vmatmul.mubr.msk.bf16.vlgmr.msra.gmra.mrb[4].mxu1 %vm616_vm3, %v539_v32  ;;  %v484_v33 = vpack.c.bf16 %v2082_v19, %v2082_v19  ;;  %v485_v34 = vpack.c.bf16 %v2089_v22, %v2089_v22 }
 0x3f1   : > { %v532_v37 = vmul.f32 %v524_v35, %v2093_v25  ;;  %1459 = vmatprep.mubr.msk.bf16.mxu1 %vm1815_vm1, %v1814_v4  ;;  %v483_v35 = vpack.c.bf16 %v2084_v20, %v2084_v20 }
 0x3f3   : > { %v536_v38 = vadd.f32 %v532_v37, %v528_v36 }
 0x3f5   : > { %v540_v39 = vpack.c.bf16 %v536_v38, %v536_v38 }
 0x3f7   : > { %1454 = vmatmul.mubr.msk.bf16.vlgmr.msra.gmra.mrb[8].mxu0 %vm616_vm3, %v540_v39 }
 0x3f8   : > { %1465 = vmatprep.mubr.msk.bf16.mxu0 %vm1815_vm1, %v1814_v4 }
 0x458   : > { %v657_v25 = vpop.f32.mrb[0].mxu1 }
 0x459   : > { %v812_v44 = vsel %vm2158_vm6, %v657_v25, -1e+30  ;;  %v1437_v45 = vpop.f32.mrb[1].mxu1 }
 0x45a   : > { %v660_v46 = vpop.f32.mrb[2].mxu1  ;;  %v816_v47 = vsel %vm616_vm3, %v812_v44, -inf }
 0x45b   : > { %817 = vmax.xlane.f32.xlu0 %v816_v47  ;;  %v1438_v48 = vpop.f32.mrb[3].mxu1 }
 0x4bf   : > { %v706_v49 = vpop.f32.mrb[4].mxu0 }
 0x4c0   : > { %v813_v50 = vsel %vm2158_vm6, %v706_v49, -1e+30  ;;  %v1443_v51 = vpop.f32.mrb[5].mxu0 }
 0x4c1   : > { %v709_v52 = vpop.f32.mrb[6].mxu0  ;;  %v819_v53 = vsel %vm616_vm3, %v813_v50, -inf }
 0x4c2   : > { %820 = vmax.xlane.f32.xlu1 %v819_v53  ;;  %v1444_v54 = vpop.f32.mrb[7].mxu0 }
 0x4c3   : > { %v755_v55 = vpop.f32.mrb[4].mxu1 }
 0x4c4   : > { %v814_v56 = vsel %vm2158_vm6, %v755_v55, -1e+30  ;;  %v1449_v57 = vpop.f32.mrb[5].mxu1 }
 0x4c5   : > { %v758_v58 = vpop.f32.mrb[6].mxu1  ;;  %v822_v59 = vsel %vm616_vm3, %v814_v56, -inf  ;;  %v1596_v57 = vld [vmem:[%s2285_s4] sm:$0xff]  }
 0x4c6   : > { %823 = vmax.xlane.f32.xlu0 %v822_v59  ;;  %v1450_v60 = vpop.f32.mrb[7].mxu1  ;;  %v1597_v58 = vld [vmem:[%s2285_s4 + $0x8] sm:$0xff]  }
 0x4ca   : > { %v804_v61 = vpop.f32.mrb[8].mxu0 }
 0x4cb   : > { %v815_v62 = vsel %vm2158_vm6, %v804_v61, -1e+30  ;;  %v1455_v63 = vpop.f32.mrb[9].mxu0 }
 0x4cc   : > { %v807_v1 = vpop.f32.mrb[10].mxu0  ;;  %v825_v2 = vsel %vm616_vm3, %v815_v62, -inf }
 0x4cd   : > { %826 = vmax.xlane.f32.xlu0 %v825_v2  ;;  %v1456_v3 = vpop.f32.mrb[11].mxu0 }
 0x4d3   : > { %865 = vrot.lane.b32.xlu1 %v482_v5, %s1825_s15 }
 0x4e8   : > { %v818_v6 = vpop.xlane.xlu0 %817 }
 0x4e9   : > { %v828_v7 = vsub.f32 %v812_v44, %v818_v6 }
 0x4eb   : > { %v832_v8 = vmul.f32 1.442695, %v828_v7 }
 0x4ed   : > { %1602 = vpow2.f32 %v832_v8 }
 0x4f7   : > { %v1603_v9 = vpop.eup %1602 }
 0x4f8   : > { %v840_v10 = vsel %vm616_vm3, %v1603_v9, 0.0 }
 0x4f9   : > { %841 = vadd.xlane.f32.xlu1 %v840_v10 }
 0x54f   : > { %v821_v11 = vpop.xlane.xlu1 %820 }
 0x550   : > { %v829_v12 = vsub.f32 %v813_v50, %v821_v11 }
 0x552   : > { %v834_v13 = vmul.f32 1.442695, %v829_v12 }
 0x553   : > { %v824_v15 = vpop.xlane.xlu0 %823  ;;  %v866_v16 = vpop.permute.xlu1 %865 }
 0x554   : > { %1604 = vpow2.f32 %v834_v13  ;;  %v830_v17 = vsub.f32 %v814_v56, %v824_v15  ;;  %v872_v14 = vsel %vm870_vm7, %v866_v16, 0 }
 0x555   : > { %1458 = vmatpush3.bf16.msra.mxu1 %v872_v14 }
 0x556   : > { %v836_v18 = vmul.f32 1.442695, %v830_v17  ;;  %1469 = vmatprep.subr.bf16.mxu1 %v1814_v4 }
 0x558   : > { %1606 = vpow2.f32 %v836_v18 }
 0x55a   : > { %v827_v21 = vpop.xlane.xlu0 %826 }
 0x55b   : > { %v831_v23 = vsub.f32 %v815_v62, %v827_v21 }
 0x55d   : > { %v838_v24 = vmul.f32 1.442695, %v831_v23 }
 0x55e   : > { %v1605_v26 = vpop.eup %1604 }
 0x55f   : > { %1608 = vpow2.f32 %v838_v24  ;;  %v843_v27 = vsel %vm616_vm3, %v1605_v26, 0.0 }
 0x560   : > { %844 = vadd.xlane.f32.xlu0 %v843_v27  ;;  %v1598_v27 = vld [vmem:[%s2286_s5] sm:$0xff]  }
 0x562   : > { %v1607_v28 = vpop.eup %1606 }
 0x563   : > { %v846_v29 = vsel %vm616_vm3, %v1607_v28, 0.0 }
 0x564   : > { %847 = vadd.xlane.f32.xlu1 %v846_v29 }
 0x569   : > { %v1609_v31 = vpop.eup %1608 }
 0x56a   : > { %v849_v32 = vsel %vm616_vm3, %v1609_v31, 0.0 }
 0x56b   : > { %850 = vadd.xlane.f32.xlu0 %v849_v32 }
 0x575   : > { %964 = vrot.lane.b32.xlu1 %v484_v33, %s1825_s15  ;;  %v1392_v33 = vld [vmem:[#allocation5] ss:$0 sm:$0xff] }
 0x579   : > { %1013 = vrot.lane.b32.xlu1 %v485_v34, %s1825_s15 }
 0x581   : > { %915 = vrot.lane.b32.xlu0 %v483_v35, %s1825_s15  ;;  %s1397_s15 = sshll.u32 %s1901_s13, 7 }
 0x582   : > { %s2237_s17 = scalar_lea.hbm %s2289_s8, %s1397_s15 }
 0x586   : > { %v842_v36 = vpop.xlane.xlu1 %841 }
 0x587   : > { %1610 = vrcp.f32 %v842_v36 }
 0x591   : > { %v1611_v37 = vpop.eup %1610 }
 0x592   : > { %v856_v38 = vmul.f32 %v1611_v37, %v1603_v9 }
 0x594   : > { %v860_v39 = vpack.c.bf16 %v856_v38, %v856_v38 }
 0x596   : > { %1460 = vmatmul.mubr.msk.bf16.vlgmr.msra.gmra.mrb[8].mxu1 %vm616_vm3, %v860_v39 }
 0x597   : > { %1471 = vmatprep.mubr.msk.bf16.mxu1 %vm1815_vm1, %v1814_v4 }
 0x5ed   : > { %v845_v19 = vpop.xlane.xlu0 %844 }
 0x5ee   : > { %1612 = vrcp.f32 %v845_v19 }
 0x5f1   : > { %v848_v22 = vpop.xlane.xlu1 %847 }
 0x5f2   : > { %1614 = vrcp.f32 %v848_v22 }
 0x5f5   : > { %v965_v40 = vpop.permute.xlu1 %964 }
 0x5f6   : > { %v970_v41 = vsel %vm870_vm7, %v965_v40, 0 }
 0x5f7   : > { %1470 = vmatpush3.bf16.msra.mxu1 %v970_v41 }
 0x5f8   : > { %v1613_v20 = vpop.eup %1612  ;;  %v851_v42 = vpop.xlane.xlu0 %850  ;;  %1481 = vmatprep.subr.bf16.mxu1 %v1814_v4 }
 0x5f9   : > { %1616 = vrcp.f32 %v851_v42  ;;  %v857_v43 = vmul.f32 %v1613_v20, %v1605_v26  ;;  %v1014_v46 = vpop.permute.xlu1 %1013 }
 0x5fa   : > { %v1019_v49 = vsel %vm870_vm7, %v1014_v46, 0 }
 0x5fb   : > { %v861_v47 = vpack.c.bf16 %v857_v43, %v857_v43 }
 0x5fc   : > { %v1615_v30 = vpop.eup %1614  ;;  %v916_v25 = vpop.permute.xlu0 %915 }
 0x5fd   : > { %v858_v44 = vmul.f32 %v1615_v30, %v1607_v28  ;;  %v921_v45 = vsel %vm870_vm7, %v916_v25, 0 }
 0x5fe   : > { %1464 = vmatpush3.bf16.msra.mxu0 %v921_v45 }
 0x5ff   : > { %v862_v48 = vpack.c.bf16 %v858_v44, %v858_v44  ;;  %1475 = vmatprep.subr.bf16.mxu0 %v1814_v4 }
 0x601   : > { %1466 = vmatmul.mubr.msk.bf16.vlgmr.msra.gmra.mrb[12].mxu0 %vm616_vm3, %v861_v47  ;;  %1472 = vmatmul.mubr.msk.bf16.vlgmr.msra.gmra.mrb[12].mxu1 %vm616_vm3, %v862_v48 }
 0x602   : > { %1476 = vmatpush3.bf16.msra.mxu0 %v1019_v49  ;;  %1477 = vmatprep.mubr.msk.bf16.mxu0 %vm1815_vm1, %v1814_v4 }
 0x603   : > { %v1617_v50 = vpop.eup %1616  ;;  %1485 = vmatprep.mubr.msk.bf16.mxu1 %vm1815_vm1, %v1814_v4  ;;  %1489 = vmatprep.subr.bf16.mxu0 %v1814_v4 }
 0x604   : > { %v859_v51 = vmul.f32 %v1617_v50, %v1609_v31  ;;  %1482 = vmatpush3.bf16.msra.mxu1 %v1596_v57 }
 0x605   : > { %1483 = vmatprep.subr.bf16.mxu1 %v1814_v4 }
 0x606   : > { %v863_v52 = vpack.c.bf16 %v859_v51, %v859_v51 }
 0x608   : > { %1484 = vmatpush3.bf16.msra.mxu1 %v1597_v58 }
 0x609   : > { %1478 = vmatmul.mubr.msk.bf16.vlgmr.msra.gmra.mrb[16].mxu0 %vm616_vm3, %v863_v52 }
 0x60a   : > { %1493 = vmatprep.mubr.msk.bf16.mxu0 %vm1815_vm1, %v1814_v4  ;;  %1490 = vmatpush3.bf16.msra.mxu0 %v1598_v27 }
 0x60b   : > { %1491 = vmatprep.subr.bf16.mxu0 %v1814_v4 }
 0x669   : > { %v908_v53 = vpop.f32.mrb[8].mxu1 }
 0x66a   : > { %v1461_v54 = vpop.f32.mrb[9].mxu1 }
 0x66b   : > { %v911_v55 = vpop.f32.mrb[10].mxu1 }
 0x66c   : > { %v1462_v56 = vpop.f32.mrb[11].mxu1 }
 0x6d4   : > { %v957_v59 = vpop.f32.mrb[12].mxu0  ;;  %v1006_v60 = vpop.f32.mrb[12].mxu1 }
 0x6d5   : > { %1066 = vrot.lane.b32.xlu1 %v1006_v60, %s1826_s22  ;;  %v1473_v61 = vpop.f32.mrb[13].mxu1  ;;  %1062 = vrot.lane.b32.xlu0 %v957_v59, %s1827_s18  ;;  %v1467_v62 = vpop.f32.mrb[13].mxu0  ;;  %s1218_s22 = scalar_lea.sflag [#allocation4], %s375_s27  ;;  %s1732_s18 = scalar_lea.vmem %s1236_s21, 128 }
 0x6d6   : > { %v960_v63 = vpop.f32.mrb[14].mxu0  ;;  %v1009_v1 = vpop.f32.mrb[14].mxu1  ;;  %p1733_p2 = scmp.ne.s32.totalorder %s1236_s21, %s1732_s18 }
 0x6d7   : > { %v1468_v2 = vpop.f32.mrb[15].mxu0  ;;  %v1474_v3 = vpop.f32.mrb[15].mxu1 }
 0x6d8   : > { %p1734_p4 = pnand %p1733_p2, %p2318_p3 }
 0x6da   : > { %p1735_p7 = pneg %p1734_p4 }
 0x6dc   : > { %v1055_v5 = vpop.f32.mrb[16].mxu0 }
 0x6dd   : > { %1070 = vrot.lane.b32.xlu0 %v1055_v5, %s1828_s16  ;;  %v1479_v6 = vpop.f32.mrb[17].mxu0  ;;  %s1829_s16 = smov [#allocation10]  }
 0x6de   : > { %v1058_v7 = vpop.f32.mrb[18].mxu0  ;;  %s1736_s29 = sshll.u32 %s1829_s16, 4  ;;  %s1737_s29 = int_to_ptr.vmem [resolvable:$false] %s1736_s29 }
 0x6df   : > { %v1480_v8 = vpop.f32.mrb[19].mxu0  ;;  %s1738_s23 = scalar_lea.vmem %s1737_s29, 256  ;;  %p1739_p8 = scmp.lt.s32.totalorder %s1236_s21, %s1737_s29 }
 0x6e0   : > { %p1740_p11 = scmp.lt.s32.totalorder %s1738_s23, %s1732_s18 }
 0x6e2   : > { %p1741_p13 = por %p1740_p11, %p1739_p8 }
 0x6e4   : > { %p1742_p1 = pnand %p1741_p13, %p1735_p7 }
 0x747   : > { %v1063_v9 = vpop.permute.xlu0 %1062  ;;  %v1067_v10 = vpop.permute.xlu1 %1066 }
 0x748   : > { %v1073_v11 = vsel %vm616_vm3, %v908_v53, %v1063_v9 }
 0x749   : > { %v1075_v12 = vsel %vm1074_vm8, %v1073_v11, %v1067_v10 }
 0x74f   : > { %v1071_v13 = vpop.permute.xlu0 %1070 }
 0x750   : > { %v1077_v15 = vsel %vm1076_vm9, %v1075_v12, %v1071_v13 }
 0x751   : > { %v1078_v16 = vpack.c.bf16 %v1077_v15, %v1077_v15 }
 0x753   : > { %1486 = vmatmul.mubr.msk.bf16.vlgmr.msra.gmra.mrb[16].mxu1 %vm396_vm0, %v1078_v16 }
 0x826   : > { %v1132_v17 = vpop.f32.mrb[16].mxu1 }
 0x827   : > { %v1138_v14 = vadd.f32 %v1132_v17, %v2058_v0  ;;  %v1487_v18 = vpop.f32.mrb[17].mxu1  ;;  %v1599_v0 = vld [vmem:[%s2286_s5 + $0x8] sm:$0xff]  }
 0x828   : > { %v1135_v21 = vpop.f32.mrb[18].mxu1  ;;  %1492 = vmatpush3.bf16.msra.mxu0 %v1599_v0 }
 0x829   : > { %v1488_v23 = vpop.f32.mrb[19].mxu1  ;;  %v1141_v24 = vmul.f32 %v1138_v14, %v1138_v14  ;;  %1139 = vst.msk [vmem:[%s377_s14] sm:$0xff] %vm396_vm0, %v1138_v14 }
 0x82b   : > { %v1142_v26 = vsel %vm396_vm0, %v1141_v24, 0.0 }
 0x82c   : > { %1143 = vadd.xlane.f32.xlu1 %v1142_v26 }
 0x8b9   : > { %v1144_v28 = vpop.xlane.xlu1 %1143 }
 0x8ba   : > { %v1145_v29 = vmul.f32 0.03125, %v1144_v28 }
 0x8bc   : > { %v1146_v31 = vadd.f32 1e-05, %v1145_v29 }
 0x8be   : > { %1618 = vrsqrt.f32 %v1146_v31 }
 0x8c8   : > { %v1619_v32 = vpop.eup %1618 }
 0x8c9   : > { %v1148_v34 = vmul.f32 %v1619_v32, %v1138_v14 }
 0x8cb   : > { %v1155_v35 = vmul.f32 %v1392_v33, %v1148_v34 }
 0x8cd   : > { %v1156_v36 = vpack.c.bf16 %v1155_v35, %v1155_v35 }
 0x8cf   : > { %1494 = vmatmul.mubr.msk.bf16.vlgmr.msra.gmra.mrb[20].mxu0 %vm396_vm0, %v1156_v36 }
 0x8d0   : > { %1745 = shalt.err (!%p1742_p1)
}
 0x8d1   : > { %s1746_s13 = scalar_lea.hbm %s2237_s17, 128  ;;  %s1750_s25 = scalar_lea.hbm %s2289_s8, 256 }
 0x8d2   : > { %p1747_p0 = scmp.ne.s32.totalorder %s2237_s17, %s1746_s13  ;;  %p1751_p9 = scmp.lt.u32.totalorder %s2237_s17, %s2289_s8 }
 0x8d3   : > { %p1752_p12 = scmp.lt.u32.totalorder %s1750_s25, %s1746_s13  ;;  %p1754_p2 = scmp.lt.u32.totalorder %s1746_s13, %s2237_s17 }
 0x8d4   : > { %p1748_p6 = pnand %p1747_p0, %p2318_p3 }
 0x8d5   : > { %p1753_p10 = por %p1752_p12, %p1751_p9 }
 0x8d6   : > { %p1749_p5 = pneg %p1748_p6 }
 0x8d7   : > { %p1755_p4 = por %p1754_p2, %p1753_p10 }
 0x8d9   : > { %p1756_p7 = pnand %p1755_p4, %p1749_p5 }
 0x8db   : > { %1759 = shalt.err (!%p1756_p7)
}
 0x8dc   : > { %1513 = dma.vmem_to_hbm [thread:$0]  (%p2318_p3), %s1236_s21, 128, %s2237_s17, %s1218_s22  }
 0x8dd   : > { %s391_s24 = scalar_lea.vmem %s2290_s9, %s1375_s2 }
 0x9a2   : > { %v1210_v4 = vpop.f32.mrb[20].mxu0 }
 0x9a3   : > { %1216 = vst.msk [vmem:[%s391_s24] sm:$0xff] %vm520_vm2, %v1210_v4  ;;  %v1495_v37 = vpop.f32.mrb[21].mxu0 }
 0x9a4   : > { %v1213_v38 = vpop.f32.mrb[22].mxu0 }
 0x9a5   : > { %v1496_v39 = vpop.f32.mrb[23].mxu0 }
 0x9a6 PF: > { %p1540_p8 = scmp.ge.s32.totalorder %s1806_s12, 2  ;;  %s1250_s19 = sand.u32 1, %s1794_s30  }
 0x9a7   : > { %p2319_p11 = scmp.ne.s32.totalorder %s2303_s20, 0  ;;  %s1251_s21 = scalar_lea.sflag [#allocation4], %s1250_s19 }
 0x9a9   : > { %p1529_p13 = pnand %p1540_p8, %p2319_p11 }
 0x9ab   : > { %1789 = dma.done.wait (!%p1529_p13), %s1251_s21, 128  }
 0x9ac   : > { %1791 = vsyncadd (!%p1529_p13), %s1251_s21, 4294967168  ;;  %s2320_s12 = sld [smem:[#allocation16_spill]]  ;;  %s2321_s1 = sld [smem:[#allocation15_spill]] }
 0x9ad   : > { %s2322_s11 = sld [smem:[#allocation17_spill]]  ;;  %s2323_s30 = smov %s1798_s10 }
 0x9b2   : > { %p23_p3 = scmp.ge.s32.totalorder %s2320_s12, 4   ;;  %s2324_s10 = smov %s2321_s1 }
 0x9b4   :  { %25 = sbr.rel (!%p23_p3) target bundleno = 9 (0x9), region = 116 }
 0x9bb   :  { %1263 = vsyncpa [#allocation3], 1 }
 0x9bc   :  { %1265 = vsyncpa [#allocation3 + $0x1], 1 }
 0x9bd   :  { %1266 = vsyncpa [#allocation6], 1 }
 0x9be   :  { %1267 = vsyncpa [#allocation9], 1 }
 0x9bf   :  { %1268 = vsyncpa [#allocation4], 1 }
 0x9c0   :  { %1270 = vsyncpa [#allocation4 + $0x1], 1 }

</bundles_post_ra>
